<compile_context>
chip_gen: v7x
topology: tpu7x:2x2x1
jax: 0.10.0
libtpu: 0.0.40
codegen_flags: <defaults>
</compile_context>

<pallas_src>
import functools

import jax
import jax.numpy as jnp
from jax.experimental import pallas as pl
from jax.experimental.pallas import tpu as pltpu


def _state_encoding_kernel(a_ref, p_ref, w_ref, out_ref, *, A, P):
    """Fused forward, fully VMEM-resident.

    a_ref: (B, A) activations (f32 in, cast to weight dtype for the MXU)
    p_ref: (B, P) activations
    w_ref: (A+P+1, O) packed weights; rows [0:A)=Wa^T, [A:A+P)=Wp^T,
           row A+P = (ba + bp)
    out_ref: (B, O) f32
    """
    wdt = w_ref.dtype
    # Two MXU dots into one f32 accumulator (replaces the out-of-kernel
    # concat).  A and P are multiples of 8, so the weight row-slices are
    # sublane-tile aligned.
    acc = jnp.dot(a_ref[...].astype(wdt), w_ref[0:A, :],
                  preferred_element_type=jnp.float32)
    acc = acc + jnp.dot(p_ref[...].astype(wdt), w_ref[A:A + P, :],
                        preferred_element_type=jnp.float32)
    # Bias row folded into the weight DMA; add + tanh stay in f32 (v5e-safe).
    bias = w_ref[A + P:A + P + 1, :].astype(jnp.float32)      # (1, O)
    out_ref[...] = jnp.tanh(acc + bias).astype(out_ref.dtype)


def prepare_state_encoding_params(wa, ba, wp, bp, weight_dtype=jnp.bfloat16):
    """Hoisted, call-once parameter prep (do NOT redo this per forward call).

    wa: (O, A), ba: (O,), wp: (O, P), bp: (O,)   -- PyTorch nn.Linear layout.
    Returns the packed weight of shape (A + P + 1, O):
        rows [0:A)   = Wa^T
        rows [A:A+P) = Wp^T
        row  A+P     = ba + bp          (bias folded into the weight operand)
    cast to `weight_dtype` (bfloat16 recommended for v6e/v7x MXU; pass
    jnp.float32 for exact parity with the f32 PyTorch module).
    """
    w_cat = jnp.concatenate([wa.T, wp.T], axis=0)          # (A+P, O) f32
    b_row = (ba + bp).reshape(1, -1)                        # (1, O)   f32
    w_pack = jnp.concatenate([w_cat, b_row], axis=0)        # (A+P+1, O)
    return w_pack.astype(weight_dtype)


def state_encoding_fused(action, perf, w_pack):
    """Fused forward. action: (B, A), perf: (B, P), w_pack: (A+P+1, O).

    Returns (B, O) float32.  No grid (no pipeline scaffolding), whole-array
    VMEM-resident blocks, two MXU dots + bias + tanh in a single kernel.
    """
    B, A = action.shape
    P = perf.shape[1]
    O = w_pack.shape[1]

    kernel = functools.partial(_state_encoding_kernel, A=A, P=P)

    return pl.pallas_call(
        kernel,
        out_shape=jax.ShapeDtypeStruct((B, O), jnp.float32),
        in_specs=[
            pl.BlockSpec(memory_space=pltpu.MemorySpace.VMEM),  # action
            pl.BlockSpec(memory_space=pltpu.MemorySpace.VMEM),  # perf
            pl.BlockSpec(memory_space=pltpu.MemorySpace.VMEM),  # packed W+b
        ],
        out_specs=pl.BlockSpec(memory_space=pltpu.MemorySpace.VMEM),
    )(action, perf, w_pack)


def state_encoding(action, perf, wa, ba, wp, bp, weight_dtype=jnp.float32):
    """Convenience wrapper matching the raw PyTorch parameter layout.
    Prefer prepare_state_encoding_params() + state_encoding_fused() so the
    transpose/concat/bias-fold/cast happens once, not per call."""
    w_pack = prepare_state_encoding_params(wa, ba, wp, bp, weight_dtype)
    return state_encoding_fused(action, perf, w_pack)


def init_linear_params(key, in_features, out_features):
    """Deterministic init mimicking PyTorch nn.Linear defaults:
    U(-1/sqrt(in), 1/sqrt(in)) for both weight and bias."""
    k_w, k_b = jax.random.split(key)
    bound = 1.0 / jnp.sqrt(float(in_features))
    w = jax.random.uniform(k_w, (out_features, in_features),
                           minval=-bound, maxval=bound, dtype=jnp.float32)
    b = jax.random.uniform(k_b, (out_features,),
                           minval=-bound, maxval=bound, dtype=jnp.float32)
    return w, b


if __name__ == "__main__":
    # Small shapes consistent with the module's forward.
    batch = 8
    action_space = 16
    perf_space = 8
    output_layer = 32

    key = jax.random.PRNGKey(0)
    k_a, k_p, k_wa, k_wp = jax.random.split(key, 4)

    action = jax.random.normal(k_a, (batch, action_space), dtype=jnp.float32)
    perf = jax.random.normal(k_p, (batch, perf_space), dtype=jnp.float32)

    wa, ba = init_linear_params(k_wa, action_space, output_layer)
    wp, bp = init_linear_params(k_wp, perf_space, output_layer)

    # Pure-JAX reference of the original (unfused) PyTorch semantics.
    ref = jnp.tanh(action @ wa.T + ba + perf @ wp.T + bp)

    fwd = jax.jit(state_encoding_fused)

    # 1) Exact-precision path (f32 weights): matches the PyTorch module.
    w_pack_f32 = prepare_state_encoding_params(wa, ba, wp, bp,
                                               weight_dtype=jnp.float32)
    out_f32 = jax.block_until_ready(fwd(action, perf, w_pack_f32))
    assert out_f32.shape == (batch, output_layer)
    assert jnp.allclose(out_f32, ref, atol=1e-5, rtol=1e-5), \
        "f32-weight path mismatch vs reference"

    # 2) Default reduced-precision-weight path (bf16 weights for the v6e/v7x
    #    MXU; f32 accumulate and f32 elementwise, v5e-safe).  Tolerance
    #    reflects bf16 rounding of weights/activations only.
    w_pack_bf16 = prepare_state_encoding_params(wa, ba, wp, bp)
    out_bf16 = jax.block_until_ready(fwd(action, perf, w_pack_bf16))
    assert out_bf16.shape == (batch, output_layer)
    assert jnp.allclose(out_bf16, ref, atol=3e-2, rtol=3e-2), \
        "bf16-weight path mismatch vs reference"

    print("KERNEL_OK")
</pallas_src>

<mosaic_0001>
module attributes {stable_mosaic.version = 11 : i64} {
  func.func @_state_encoding_kernel(%arg0: memref<8x16xf32, #tpu.memory_space<vmem>>, %arg1: memref<8x8xf32, #tpu.memory_space<vmem>>, %arg2: memref<25x32xf32, #tpu.memory_space<vmem>>, %arg3: memref<8x32xf32, #tpu.memory_space<vmem>>) attributes {dimension_semantics = [], scalar_prefetch = 0 : i64, scratch_operands = 0 : i64, tpu.core_type = #tpu.core_type<tc>} {
    %c0 = arith.constant 0 : index
    %c0_0 = arith.constant 0 : index
    %0 = vector.load %arg0[%c0, %c0_0] : memref<8x16xf32, #tpu.memory_space<vmem>>, vector<8x16xf32>
    %c0_1 = arith.constant 0 : index
    %c0_2 = arith.constant 0 : index
    %1 = vector.load %arg2[%c0_1, %c0_2] : memref<25x32xf32, #tpu.memory_space<vmem>>, vector<16x32xf32>
    %cst = arith.constant dense<0.000000e+00> : vector<8x32xf32>
    %2 = tpu.matmul %0, %1, %cst {dimension_numbers = #tpu.dot_dimension_numbers<[1], [0], [0], [1], [0, 0, 1, 1], [], []>} : vector<8x16xf32>, vector<16x32xf32>, vector<8x32xf32> -> vector<8x32xf32>
    %c0_3 = arith.constant 0 : index
    %c0_4 = arith.constant 0 : index
    %3 = vector.load %arg1[%c0_3, %c0_4] : memref<8x8xf32, #tpu.memory_space<vmem>>, vector<8x8xf32>
    %c16 = arith.constant 16 : index
    %c0_5 = arith.constant 0 : index
    %4 = vector.load %arg2[%c16, %c0_5] : memref<25x32xf32, #tpu.memory_space<vmem>>, vector<8x32xf32>
    %cst_6 = arith.constant dense<0.000000e+00> : vector<8x32xf32>
    %5 = tpu.matmul %3, %4, %cst_6 {dimension_numbers = #tpu.dot_dimension_numbers<[1], [0], [0], [1], [0, 0, 1, 1], [], []>} : vector<8x8xf32>, vector<8x32xf32>, vector<8x32xf32> -> vector<8x32xf32>
    %6 = arith.addf %2, %5 : vector<8x32xf32>
    %c24 = arith.constant 24 : index
    %c0_7 = arith.constant 0 : index
    %7 = vector.load %arg2[%c24, %c0_7] : memref<25x32xf32, #tpu.memory_space<vmem>>, vector<1x32xf32>
    %8 = vector.broadcast %7 : vector<1x32xf32> to vector<8x32xf32>
    %9 = arith.addf %6, %8 : vector<8x32xf32>
    %10 = math.tanh %9 : vector<8x32xf32>
    %c0_8 = arith.constant 0 : index
    %c0_9 = arith.constant 0 : index
    %11 = vector.load %arg3[%c0_8, %c0_9] : memref<8x32xf32, #tpu.memory_space<vmem>>, vector<8x32xf32>
    tpu.vector_store %arg3[%c0_8, %c0_9], %10 {strides = array<i32>} : memref<8x32xf32, #tpu.memory_space<vmem>>, vector<8x32xf32>,
    return
  }
}

</mosaic_0001>

<bundles_post_ra>
// kernel: state_encoding_fused.1
= control target key start
LH: loop header
LB: loop body
LE: loop exit
PB: predicated region body
PF: predicated region fallthrough
CT: control target
= control target key end

     0   :  { %8 = vsyncpa [#allocation3], 0  ;;  %s435_s0 = inlined_call_operand.hbm [shape: f32[8,16], index: 0, kind: input, shape index: {}]   ;;  %s436_s1 = inlined_call_operand.hbm [shape: f32[8,8], index: 1, kind: input, shape index: {}]   ;;  %s437_s2 = inlined_call_operand.hbm [shape: f32[25,32], index: 2, kind: input, shape index: {}]   ;;  %s438_s3 = inlined_call_operand.hbm [shape: f32[8,32], index: 3, kind: output, shape index: {}]  }
   0x1   :  { %9 = vsyncpa [#allocation6], 0 }
   0x2   :  { %10 = vsyncpa [#allocation4], 0  ;;  %s358_s12 = smov [#allocation5]   ;;  %s359_s14 = smov [#allocation2]  }
   0x3   :  { %s27_s13 = sshll.u32 %s358_s12, 4  ;;  %s17_s15 = sshll.u32 %s359_s14, 4  ;;  %s28_s13 = int_to_ptr.vmem [resolvable:$true] %s27_s13  ;;  %s18_s15 = int_to_ptr.vmem [resolvable:$true] %s17_s15 }
   0x4   :  { %s264_s18 = scalar_lea.hbm %s436_s1, 128 }
   0x5   :  { %p265_p0 = scmp.ne.s32.totalorder %s436_s1, %s264_s18  ;;  %p268_p1 = scmp.lt.u32.totalorder %s264_s18, %s436_s1 }
   0x7   :  { %p270_p2 = pnand %p268_p1, %p265_p0 }
   0x9   :  { %273 = shalt.err (!%p270_p2)
}
   0xa   :  { %s274_s23 = scalar_lea.vmem %s28_s13, 128  ;;  %p279_p4 = scmp.lt.s32.totalorder %s28_s13, %s28_s13 }
   0xb   :  { %p275_p3 = scmp.ne.s32.totalorder %s28_s13, %s274_s23  ;;  %p280_p5 = scmp.lt.s32.totalorder %s274_s23, %s274_s23 }
   0xd   :  { %p281_p6 = por %p280_p5, %p279_p4 }
   0xf   :  { %p282_p7 = pnand %p281_p6, %p275_p3 }
  0x11   :  { %285 = shalt.err (!%p282_p7)
}
  0x12   :  { %30 = dma.hbm_to_vmem [thread:$0]  %s436_s1, 128, %s28_s13, [#allocation6]  }
  0x13   :  { %s286_s28 = scalar_lea.hbm %s435_s0, 128 }
  0x14   :  { %p287_p8 = scmp.ne.s32.totalorder %s435_s0, %s286_s28  ;;  %p290_p9 = scmp.lt.u32.totalorder %s286_s28, %s435_s0 }
  0x16   :  { %p292_p10 = pnand %p290_p9, %p287_p8 }
  0x18   :  { %295 = shalt.err (!%p292_p10)
}
  0x19   :  { %s296_s6 = scalar_lea.vmem %s18_s15, 128  ;;  %p301_p12 = scmp.lt.s32.totalorder %s18_s15, %s18_s15 }
  0x1a   :  { %p297_p11 = scmp.ne.s32.totalorder %s18_s15, %s296_s6  ;;  %p302_p13 = scmp.lt.s32.totalorder %s296_s6, %s296_s6 }
  0x1c   :  { %p303_p0 = por %p302_p13, %p301_p12 }
  0x1e   :  { %p304_p1 = pnand %p303_p0, %p297_p11 }
  0x20   :  { %307 = shalt.err (!%p304_p1)
}
  0x21   :  { %20 = dma.hbm_to_vmem [thread:$0]  %s435_s0, 128, %s18_s15, [#allocation3]  }
  0x22   :  { %s360_s8 = smov [#allocation7]   ;;  %s308_s12 = scalar_lea.hbm %s437_s2, 512 }
  0x23   :  { %s36_s9 = sshll.u32 %s360_s8, 4  ;;  %p309_p2 = scmp.ne.s32.totalorder %s437_s2, %s308_s12  ;;  %s37_s9 = int_to_ptr.vmem [resolvable:$true] %s36_s9 }
  0x24   :  { %p312_p3 = scmp.lt.u32.totalorder %s308_s12, %s437_s2 }
  0x26   :  { %p314_p4 = pnand %p312_p3, %p309_p2 }
  0x28   :  { %317 = shalt.err (!%p314_p4)
}
  0x29   :  { %s318_s18 = scalar_lea.vmem %s37_s9, 512  ;;  %p323_p6 = scmp.lt.s32.totalorder %s37_s9, %s37_s9 }
  0x2a   :  { %p319_p5 = scmp.ne.s32.totalorder %s37_s9, %s318_s18  ;;  %p324_p7 = scmp.lt.s32.totalorder %s318_s18, %s318_s18 }
  0x2c   :  { %p325_p8 = por %p324_p7, %p323_p6 }
  0x2e   :  { %p326_p9 = pnand %p325_p8, %p319_p5 }
  0x30   :  { %329 = shalt.err (!%p326_p9)
}
  0x31   :  { %s361_s0 = smov 128   ;;  %s362_s15 = smov 8  }
  0x32   :  { %42 = dma.hbm_to_vmem [thread:$0]  %s437_s2, 512, %s37_s9, [#allocation6], %s361_s0, %s361_s0, %s362_s15  }
  0x33   :  { %352 = dma.done.wait [#allocation3], 128  }
  0x34   :  { %353 = vsyncadd [#allocation3], 4294967168 }
  0x35   :  { %354 = dma.done.wait [#allocation6], 640  }
  0x36   :  { %355 = vsyncadd [#allocation6], 4294966656  ;;  %v363_v0 = vmov 0.0|0.0   ;;  %v364_v1 = vmov 0.0   ;;  %vm365_vm0 = vmmov 0   ;;  %vm57_vm1 = vcmask 64512  }
  0x37   :  { %250 = vmatprep.subr.bf16.mxu1 %v363_v0  ;;  %238 = vmatprep.subr.mxu0 %v364_v1  ;;  %v53_v2 = vld [vmem:[#allocation7] sm:$0xff]  ;;  %v54_v3 = vld [vmem:[#allocation7 + $0x8] sm:$0xff]  ;;  %v56_v4 = vld [vmem:[#allocation7 + $0x10] sm:$0xff]  ;;  %vm131_vm2 = vcmask 130048   ;;  %s366_s2 = smov [#allocation8]   ;;  %vm212_vm3 = vcmask 261120  }
  0x38   :  { %240 = vmatprep.mubr.msk.f32.mxu0 %vm365_vm0, %v364_v1  ;;  %247 = vmatprep.mubr.msk.f32.mxu1 %vm365_vm0, %v364_v1  ;;  %v251_v5 = vpack.c.bf16 %v54_v3, %v53_v2  ;;  %v55_v6 = vld [vmem:[#allocation5] sm:$0xff]  ;;  %v52_v7 = vld [vmem:[#allocation2] sm:$0xff]  ;;  %s220_s21 = sshll.u32 %s366_s2, 4  ;;  %s221_s21 = int_to_ptr.vmem [resolvable:$true] %s220_s21 }
  0x39   :  { %239 = vmatpush3.msra.mxu0 %v56_v4  ;;  %v232_v11 = vld [vmem:[#allocation7 + $0x18] ss:$0 sm:$0xff]  ;;  %s330_s22 = scalar_lea.vmem %s221_s21, 128  ;;  %p335_p11 = scmp.lt.s32.totalorder %s221_s21, %s221_s21 }
  0x3a   :  { %241 = vmatmul.mubr.msk.f32.vlgmr.msra.gmra.mrb[0].mxu0 %vm57_vm1, %v55_v6  ;;  %252 = vmatpush3.bf16.msra.mxu1 %v251_v5  ;;  %p331_p10 = scmp.ne.s32.totalorder %s221_s21, %s330_s22  ;;  %p336_p12 = scmp.lt.s32.totalorder %s330_s22, %s330_s22 }
  0x3c   :  { %p337_p13 = por %p336_p12, %p335_p11 }
  0x3d   :  { %248 = vmatmul.mubr.msk.f32.vlgmr.msra.gmra.mrb[0].mxu1 %vm131_vm2, %v52_v7 }
  0x3e   :  { %p338_p0 = pnand %p337_p13, %p331_p10 }
 0x10d   :  { %v127_v8 = vpop.f32.mrb[0].mxu0 }
 0x10e   :  { %v242_v9 = vpop.f32.mrb[1].mxu0 }
 0x110   :  { %v201_v10 = vpop.f32.mrb[0].mxu1 }
 0x111   :  { %v202_v12 = vadd.f32 %v201_v10, %v127_v8  ;;  %v249_v13 = vpop.f32.mrb[1].mxu1 }
 0x113   :  { %v210_v14 = vadd.f32 %v232_v11, %v202_v12 }
 0x115   :  { %262 = vtanh.f32 %v210_v14 }
 0x11f   :  { %v263_v15 = vpop.eup %262 }
 0x120   :  { %213 = vst.msk [vmem:[#allocation8] sm:$0xff] %vm212_vm3, %v263_v15 }
 0x121   :  { %341 = shalt.err (!%p338_p0)
}
 0x122   :  { %s342_s25 = scalar_lea.hbm %s438_s3, 128 }
 0x123   :  { %p343_p1 = scmp.ne.s32.totalorder %s438_s3, %s342_s25  ;;  %p346_p2 = scmp.lt.u32.totalorder %s342_s25, %s438_s3 }
 0x125   :  { %p348_p3 = pnand %p346_p2, %p343_p1 }
 0x127   :  { %351 = shalt.err (!%p348_p3)
}
 0x128   :  { %223 = dma.vmem_to_hbm [thread:$0]  %s221_s21, 128, %s438_s3, [#allocation4]  }
 0x129   :  { %356 = dma.done.wait [#allocation4], 128  }
 0x12a   :  { %357 = vsyncadd [#allocation4], 4294967168 }
 0x12b   :  { %227 = vsyncpa [#allocation3], 1 }
 0x12c   :  { %228 = vsyncpa [#allocation6], 1 }
 0x12d   :  { %229 = vsyncpa [#allocation4], 1 }

</bundles_post_ra>
